<compile_context>
chip_gen: v7x
topology: tpu7x:2x2x1
jax: 0.10.0
libtpu: 0.0.40
codegen_flags: <defaults>
</compile_context>

<pallas_src>
import jax
import jax.numpy as jnp
from jax import lax
from jax.experimental import pallas as pl
from jax.experimental.pallas import tpu as pltpu


def _rope_kernel(pos_ref, x_ref, tab_ref, o_ref):
    """Fused RoPE: one-hot table gather (MXU) + pair swizzle (XLU) + rotate (VPU)."""
    x = x_ref[...].astype(jnp.float32)                     # (tR, D)
    tR, D = x.shape
    L = tab_ref.shape[0]

    # Clamp positions like a jnp gather would (avoids silent zero rows).
    pos = jnp.clip(pos_ref[...], 0, L - 1)                 # (tR, 1) int32

    # --- Gather per-row [cos | signed-sin] rows with a single one-hot matmul.
    # Mosaic's f32 MXU path keeps full f32 precision for the selected rows
    # (one-hot entries are exactly 0/1); the MXU is otherwise idle here.
    p_iota = lax.broadcasted_iota(jnp.int32, (tR, L), 1)
    onehot = (p_iota == pos).astype(jnp.float32)           # (tR, L)
    tab = jnp.dot(onehot, tab_ref[...],
                  preferred_element_type=jnp.float32)      # (tR, 2*D)
    cos = tab[:, :D]        # [c0, c0, c1, c1, ...]
    sin = tab[:, D:]        # [-s0, s0, -s1, s1, ...]

    # --- Swap adjacent even/odd lanes: swapped[2i] = x[2i+1], swapped[2i+1] = x[2i].
    lane = lax.broadcasted_iota(jnp.int32, (tR, D), 1)
    is_even = (lane & 1) == 0
    x_next = pltpu.roll(x, D - 1, 1)                       # y[i] = x[(i + 1) % D]
    x_prev = pltpu.roll(x, 1, 1)                           # y[i] = x[(i - 1) % D]
    swapped = jnp.where(is_even, x_next, x_prev)

    # out[2i]   = x[2i]*c   - x[2i+1]*s
    # out[2i+1] = x[2i+1]*c + x[2i]*s
    o_ref[...] = (x * cos + swapped * sin).astype(o_ref.dtype)


def make_rope_tables(theta: float, d_k: int, seq_len: int):
    """Raw (seq_len, d_k//2) cos/sin buffers, mirroring the PyTorch __init__."""
    inv_freq = 1.0 / theta ** (jnp.arange(0, d_k, 2, dtype=jnp.float32) / d_k)
    positions = jnp.arange(seq_len, dtype=jnp.float32)
    freqs = jnp.outer(positions, inv_freq)                 # (seq_len, d_k // 2)
    return jnp.cos(freqs), jnp.sin(freqs)


def build_fused_table(cos, sin):
    """One-time expansion to a single (L, 2*d_k) [cos-repeated | signed-sin] table."""
    L = cos.shape[0]
    cos_full = jnp.repeat(cos, 2, axis=-1)                         # [c0,c0,c1,c1,...]
    sin_signed = jnp.stack([-sin, sin], axis=-1).reshape(L, -1)    # [-s0,s0,-s1,s1,...]
    return jnp.concatenate([cos_full, sin_signed], axis=-1)        # (L, 2*d_k)


def _pick_row_tile(n_rows: int, dtype) -> int:
    """Largest power-of-two row tile <= 2048 dividing n_rows, dtype-packing aware."""
    itemsize = jnp.dtype(dtype).itemsize
    min_rows = 8 * max(1, 4 // max(itemsize, 1))   # f32: 8, bf16: 16, int8/fp8: 32
    cand = 2048
    while cand >= min_rows:
        if n_rows % cand == 0:
            return cand
        cand //= 2
    return n_rows  # full extent is always a legal block


def rope_forward(x, token_positions, rope_table):
    B, S, D = x.shape
    L = rope_table.shape[0]
    assert rope_table.shape[1] == 2 * D
    N = B * S
    tR = _pick_row_tile(N, x.dtype)

    xf = x.reshape(N, D)                                   # free row-major reshape
    pos2 = token_positions.astype(jnp.int32).reshape(N, 1)

    row_spec = pl.BlockSpec((tR, D), lambda r: (r, 0))
    out = pl.pallas_call(
        _rope_kernel,
        out_shape=jax.ShapeDtypeStruct((N, D), x.dtype),
        grid_spec=pltpu.PrefetchScalarGridSpec(
            num_scalar_prefetch=0,
            grid=(N // tR,),
            in_specs=[
                pl.BlockSpec((tR, 1), lambda r: (r, 0)),      # token positions
                row_spec,                                     # x rows
                pl.BlockSpec((L, 2 * D), lambda r: (0, 0)),   # fused cos|sin table
            ],
            out_specs=row_spec,
        ),
        input_output_aliases={1: 0},   # rotate in place over x's buffer
        compiler_params=pltpu.CompilerParams(
            dimension_semantics=("parallel",)),
    )(pos2, xf, rope_table)
    return out.reshape(B, S, D)


def rope_reference(x, token_positions, cos_table, sin_table):
    """Pure-JAX reference matching the PyTorch forward exactly (f32 tables)."""
    cos = cos_table[token_positions]
    sin = sin_table[token_positions]
    xp = x.reshape(*x.shape[:-1], -1, 2)
    xe, xo = xp[..., 0], xp[..., 1]
    re = xe * cos - xo * sin
    ro = xo * cos + xe * sin
    return jnp.stack([re, ro], axis=-1).reshape(x.shape)


if __name__ == "__main__":
    theta = 10000.0
    d_k = 128        # head dim (lane-dense last axis)
    seq_len = 64     # max positions stored in the cos/sin buffers
    B, S = 2, 16     # batch, actual sequence length of x

    cos_tab, sin_tab = make_rope_tables(theta, d_k, seq_len)
    fused_tab = build_fused_table(cos_tab, sin_tab)

    key = jax.random.PRNGKey(0)
    kx, kp = jax.random.split(key)
    x = jax.random.normal(kx, (B, S, d_k), dtype=jnp.float32)
    token_positions = jax.random.randint(kp, (B, S), 0, seq_len, dtype=jnp.int32)

    # Reference first (x's buffer may be aliased/donated by the kernel call).
    ref = rope_reference(x, token_positions, cos_tab, sin_tab)

    rope_fn = jax.jit(rope_forward)
    out = rope_fn(x, token_positions, fused_tab)
    out = jax.block_until_ready(out)

    assert out.shape == x.shape and out.dtype == x.dtype
    assert jnp.allclose(out, ref, atol=1e-5, rtol=1e-5)

    print("KERNEL_OK")
</pallas_src>

<mosaic_0001>
module attributes {stable_mosaic.version = 11 : i64} {
  func.func @_rope_kernel(%arg0: i32, %arg1: memref<32x1xi32, #tpu.memory_space<vmem>>, %arg2: memref<32x128xf32, #tpu.memory_space<vmem>>, %arg3: memref<64x256xf32, #tpu.memory_space<vmem>>, %arg4: memref<32x128xf32, #tpu.memory_space<vmem>>) attributes {dimension_semantics = [#tpu.dimension_semantics<parallel>], iteration_bounds = array<i64: 1>, scalar_prefetch = 0 : i64, scratch_operands = 0 : i64, tpu.core_type = #tpu.core_type<tc>, window_params = [{transform_indices = @transform_0, window_bounds = array<i64: 32, 1>}, {transform_indices = @transform_1, window_bounds = array<i64: 32, 128>}, {pipeline_mode = #tpu.pipeline_mode<synchronous>, transform_indices = @transform_2, window_bounds = array<i64: 64, 256>}, {transform_indices = @transform_3, window_bounds = array<i64: 32, 128>}]} {
    %c0 = arith.constant 0 : index
    %c0_0 = arith.constant 0 : index
    %0 = vector.load %arg2[%c0, %c0_0] : memref<32x128xf32, #tpu.memory_space<vmem>>, vector<32x128xf32>
    %c0_1 = arith.constant 0 : index
    %c0_2 = arith.constant 0 : index
    %1 = vector.load %arg1[%c0_1, %c0_2] : memref<32x1xi32, #tpu.memory_space<vmem>>, vector<32x1xi32>
    %c0_i32 = arith.constant 0 : i32
    %c63_i32 = arith.constant 63 : i32
    %2 = vector.broadcast %c0_i32 : i32 to vector<32x1xi32>
    %3 = arith.maxsi %2, %1 : vector<32x1xi32>
    %4 = vector.broadcast %c63_i32 : i32 to vector<32x1xi32>
    %5 = arith.minsi %4, %3 : vector<32x1xi32>
    %6 = tpu.iota {dimensions = array<i32: 1>} : vector<32x64xi32>
    %7 = vector.broadcast %5 : vector<32x1xi32> to vector<32x64xi32>
    %8 = arith.cmpi eq, %6, %7 : vector<32x64xi32>
    %9 = arith.extui %8 : vector<32x64xi1> to vector<32x64xi32>
    %10 = arith.sitofp %9 : vector<32x64xi32> to vector<32x64xf32>
    %c0_3 = arith.constant 0 : index
    %c0_4 = arith.constant 0 : index
    %11 = vector.load %arg3[%c0_3, %c0_4] : memref<64x256xf32, #tpu.memory_space<vmem>>, vector<64x256xf32>
    %cst = arith.constant dense<0.000000e+00> : vector<32x256xf32>
    %12 = tpu.matmul %10, %11, %cst {dimension_numbers = #tpu.dot_dimension_numbers<[1], [0], [0], [1], [0, 0, 1, 1], [], []>} : vector<32x64xf32>, vector<64x256xf32>, vector<32x256xf32> -> vector<32x256xf32>
    %13 = vector.extract_strided_slice %12 {offsets = [0, 0], sizes = [32, 128], strides = [1, 1]} : vector<32x256xf32> to vector<32x128xf32>
    %14 = vector.extract_strided_slice %12 {offsets = [0, 128], sizes = [32, 128], strides = [1, 1]} : vector<32x256xf32> to vector<32x128xf32>
    %15 = tpu.iota {dimensions = array<i32: 1>} : vector<32x128xi32>
    %c1_i32 = arith.constant 1 : i32
    %16 = vector.broadcast %c1_i32 : i32 to vector<32x128xi32>
    %17 = arith.andi %15, %16 : vector<32x128xi32>
    %c0_i32_5 = arith.constant 0 : i32
    %18 = vector.broadcast %c0_i32_5 : i32 to vector<32x128xi32>
    %19 = arith.cmpi eq, %17, %18 : vector<32x128xi32>
    %c127_i32 = arith.constant 127 : i32
    %20 = tpu.dynamic_rotate %0 by %c127_i32 dim 1 : vector<32x128xf32>, i32 -> vector<32x128xf32>
    %c1_i32_6 = arith.constant 1 : i32
    %21 = tpu.dynamic_rotate %0 by %c1_i32_6 dim 1 : vector<32x128xf32>, i32 -> vector<32x128xf32>
    %22 = arith.select %19, %20, %21 : vector<32x128xi1>, vector<32x128xf32>
    %23 = arith.mulf %0, %13 : vector<32x128xf32>
    %24 = arith.mulf %22, %14 : vector<32x128xf32>
    %25 = arith.addf %23, %24 : vector<32x128xf32>
    %c0_7 = arith.constant 0 : index
    %c0_8 = arith.constant 0 : index
    %26 = vector.load %arg4[%c0_7, %c0_8] : memref<32x128xf32, #tpu.memory_space<vmem>>, vector<32x128xf32>
    tpu.vector_store %arg4[%c0_7, %c0_8], %25 {strides = array<i32>} : memref<32x128xf32, #tpu.memory_space<vmem>>, vector<32x128xf32>,
    return
  }
  func.func @transform_0(%arg0: i32) -> (i32, i32) {
    %c0_i32 = arith.constant 0 : i32
    %c0_i32_0 = arith.constant 0 : i32
    return %arg0, %c0_i32 : i32, i32
  }
  func.func @transform_1(%arg0: i32) -> (i32, i32) {
    %c0_i32 = arith.constant 0 : i32
    %c0_i32_0 = arith.constant 0 : i32
    return %arg0, %c0_i32 : i32, i32
  }
  func.func @transform_2(%arg0: i32) -> (i32, i32) {
    %c0_i32 = arith.constant 0 : i32
    %c0_i32_0 = arith.constant 0 : i32
    %c0_i32_1 = arith.constant 0 : i32
    return %c0_i32, %c0_i32_0 : i32, i32
  }
  func.func @transform_3(%arg0: i32) -> (i32, i32) {
    %c0_i32 = arith.constant 0 : i32
    %c0_i32_0 = arith.constant 0 : i32
    return %arg0, %c0_i32 : i32, i32
  }
}

</mosaic_0001>

<bundles_post_ra>
// kernel: rope_forward.1
= control target key start
LH: loop header
LB: loop body
LE: loop exit
PB: predicated region body
PF: predicated region fallthrough
CT: control target
= control target key end

     0   :  { %8 = vsyncpa [#allocation3], 0  ;;  %s304_s12 = smov [#allocation2]   ;;  %s403_s0 = inlined_call_operand.vmem [shape: s32[32,1], index: 0, kind: input, shape index: {}]   ;;  %s404_s1 = inlined_call_operand.vmem [shape: f32[32,128], index: 1, kind: input, shape index: {}, may-alias: {1,3}]   ;;  %s405_s2 = inlined_call_operand.hbm [shape: f32[64,256], index: 2, kind: input, shape index: {}]   ;;  %s406_s3 = inlined_call_operand.vmem [shape: f32[32,128], index: 3, kind: output, shape index: {}, may-alias: {1,3}]  }
   0x1   :  { %s18_s13 = sshll.u32 %s304_s12, 4  ;;  %s280_s16 = scalar_lea.hbm %s405_s2, 2048  ;;  %s19_s13 = int_to_ptr.vmem [resolvable:$true] %s18_s13 }
   0x2   :  { %p281_p0 = scmp.ne.s32.totalorder %s405_s2, %s280_s16  ;;  %p284_p1 = scmp.lt.u32.totalorder %s280_s16, %s405_s2 }
   0x4   :  { %p286_p2 = pnand %p284_p1, %p281_p0 }
   0x6   :  { %289 = shalt.err (!%p286_p2)
}
   0x7   :  { %s290_s21 = scalar_lea.vmem %s19_s13, 2048  ;;  %p295_p4 = scmp.lt.s32.totalorder %s19_s13, %s19_s13 }
   0x8   :  { %p291_p3 = scmp.ne.s32.totalorder %s19_s13, %s290_s21  ;;  %p296_p5 = scmp.lt.s32.totalorder %s290_s21, %s290_s21 }
   0xa   :  { %p297_p6 = por %p296_p5, %p295_p4 }
   0xc   :  { %p298_p7 = pnand %p297_p6, %p291_p3 }
   0xe   :  { %301 = shalt.err (!%p298_p7)
}
   0xf   :  { %s305_s22 = smov 256   ;;  %s306_s23 = smov 16  }
  0x10   :  { %24 = dma.hbm_to_vmem [thread:$0]  %s405_s2, 2048, %s19_s13, [#allocation3], %s305_s22, %s305_s22, %s306_s23  }
  0x11   :  { %302 = dma.done.wait [#allocation3], 2048  }
  0x12   :  { %303 = vsyncadd [#allocation3], 4294965248  ;;  %v307_v0 = vmov 0   ;;  %v308_v1 = vmov 0.0   ;;  %v33_v2 = vld [vmem:[%s403_s0 + $0x8] sm:$0xff]  ;;  %v32_v3 = vld [vmem:[%s403_s0] sm:$0xff]  ;;  %v52_v42 = vlaneseq }
  0x13   :  { %279 = vset.pattern.permute.xlu1 %v307_v0  ;;  %278 = vset.pattern.permute.xlu0 %v307_v0  ;;  %v35_v4 = vld [vmem:[%s403_s0 + $0x18] sm:$0xff]  ;;  %vm38_vm0 = vcmp.gt.s32.totalorder %v33_v2, 0  ;;  %vm36_vm1 = vcmp.gt.s32.totalorder %v32_v3, 0  ;;  %v34_v5 = vld [vmem:[%s403_s0 + $0x10] sm:$0xff]  ;;  %v79_v6 = vld [vmem:[#allocation2 + $0x8] sm:$0xff]  ;;  %s309_s9 = smov 127  }
  0x14   :  { %171 = vmatprep.mubr.f32.mxu0 %v308_v1  ;;  %183 = vmatprep.mubr.f32.mxu1 %v308_v1  ;;  %vm42_vm2 = vcmp.gt.s32.totalorder %v35_v4, 0  ;;  %v81_v7 = vld [vmem:[#allocation2 + $0x18] sm:$0xff]  ;;  %v39_v8 = vsel %vm38_vm0, %v33_v2, 0  ;;  %v37_v9 = vsel %vm36_vm1, %v32_v3, 0  ;;  %vm40_vm3 = vcmp.gt.s32.totalorder %v34_v5, 0  ;;  %v78_v11 = vld [vmem:[#allocation2] sm:$0xff] }
  0x15   :  { %v43_v10 = vsel %vm42_vm2, %v35_v4, 0  ;;  %v80_v12 = vld [vmem:[#allocation2 + $0x10] sm:$0xff]  ;;  %vm46_vm4 = vcmp.lt.s32.totalorder %v39_v8, 63  ;;  %vm44_vm5 = vcmp.lt.s32.totalorder %v37_v9, 63  ;;  %v41_v13 = vsel %vm40_vm3, %v34_v5, 0  ;;  %v83_v14 = vld [vmem:[#allocation2 + $0x28] sm:$0xff] }
  0x16   :  { %vm50_vm6 = vcmp.lt.s32.totalorder %v43_v10, 63  ;;  %v85_v15 = vld [vmem:[#allocation2 + $0x38] sm:$0xff]  ;;  %v47_v16 = vsel %vm46_vm4, %v39_v8, 63  ;;  %v45_v17 = vsel %vm44_vm5, %v37_v9, 63  ;;  %vm48_vm7 = vcmp.lt.s32.totalorder %v41_v13, 63  ;;  %v82_v20 = vld [vmem:[#allocation2 + $0x20] sm:$0xff] }
  0x17   :  { %58 = vperm.xlu1 %279, %v47_v16   ;;  %55 = vperm.xlu0 %278, %v45_v17   ;;  %v247_v18 = vpack.c.bf16 %v81_v7, %v79_v6  ;;  %v249_v19 = vpack.c.bf16 %v80_v12, %v78_v11  ;;  %v84_v21 = vld [vmem:[#allocation2 + $0x30] sm:$0xff]  ;;  %v51_v22 = vsel %vm50_vm6, %v43_v10, 63  ;;  %v49_v23 = vsel %vm48_vm7, %v41_v13, 63  ;;  %v87_v25 = vld [vmem:[#allocation2 + $0x48] sm:$0xff]  ;;  %v89_v26 = vld [vmem:[#allocation2 + $0x58] sm:$0xff]  ;;  %s310_s14 = smov 1  }
  0x18   :  { %v251_v24 = vpack.c.bf16 %v85_v15, %v83_v14  ;;  %v253_v27 = vpack.c.bf16 %v84_v21, %v82_v20  ;;  %v255_v28 = vpack.c.bf16 %v89_v26, %v87_v25  ;;  %v86_v29 = vld [vmem:[#allocation2 + $0x40] sm:$0xff]  ;;  %v88_v30 = vld [vmem:[#allocation2 + $0x50] sm:$0xff]  ;;  %v91_v31 = vld [vmem:[#allocation2 + $0x68] sm:$0xff]  ;;  %v53_v43 = vand.u32 127, %v52_v42 }
  0x19   :  { %248 = vmatprep.subr.bf16.mxu0 %v247_v18  ;;  %263 = vmatprep.subr.bf16.mxu1 %v247_v18  ;;  %v93_v32 = vld [vmem:[#allocation2 + $0x78] sm:$0xff]  ;;  %v257_v33 = vpack.c.bf16 %v88_v30, %v86_v29  ;;  %v90_v35 = vld [vmem:[#allocation2 + $0x60] sm:$0xff]  ;;  %v92_v36 = vld [vmem:[#allocation2 + $0x70] sm:$0xff]  ;;  %vm94_vm8 = vcmask 523264  }
  0x1a   :  { %250 = vmatpush1.bf16.msra.mxu0 %v249_v19  ;;  %267 = vmatpush1.bf16.msra.mxu1 %v249_v19  ;;  %v259_v34 = vpack.c.bf16 %v93_v32, %v91_v31  ;;  %v29_v37 = vld [vmem:[%s404_s1 + $0x8] sm:$0xff]  ;;  %v28_v38 = vld [vmem:[%s404_s1] sm:$0xff]  ;;  %v261_v39 = vpack.c.bf16 %v92_v36, %v90_v35  ;;  %v31_v40 = vld [vmem:[%s404_s1 + $0x18] sm:$0xff]  ;;  %v196_v56 = vand.u32 1, %v53_v43 }
  0x1b   :  { %64 = vperm.xlu1 %279, %v51_v22   ;;  %61 = vperm.xlu0 %278, %v49_v23   ;;  %v30_v41 = vld [vmem:[%s404_s1 + $0x10] sm:$0xff] }
  0x1c   :  { %252 = vmatprep.subr.bf16.mxu0 %v251_v24  ;;  %264 = vmatprep.subr.bf16.mxu1 %v251_v24  ;;  %vm379_vm13 = vcmp.eq.s32.totalorder %v196_v56, 0 }
  0x1e   :  { %254 = vmatpush1.bf16.msra.mxu0 %v253_v27  ;;  %268 = vmatpush1.bf16.msra.mxu1 %v253_v27 }
  0x1f   :  { %256 = vmatprep.subr.bf16.mxu0 %v255_v28  ;;  %265 = vmatprep.subr.bf16.mxu1 %v255_v28 }
  0x20   :  { %200 = vrot.lane.b32.xlu1 %v29_v37, %s309_s9  ;;  %198 = vrot.lane.b32.xlu0 %v28_v38, %s309_s9 }
  0x22   :  { %258 = vmatpush1.bf16.msra.mxu0 %v257_v33  ;;  %269 = vmatpush1.bf16.msra.mxu1 %v257_v33 }
  0x23   :  { %260 = vmatprep.subr.bf16.mxu0 %v259_v34  ;;  %266 = vmatprep.subr.bf16.mxu1 %v259_v34 }
  0x24   :  { %204 = vrot.lane.b32.xlu1 %v31_v40, %s309_s9  ;;  %202 = vrot.lane.b32.xlu0 %v30_v41, %s309_s9 }
  0x26   :  { %262 = vmatpush1.bf16.msra.mxu0 %v261_v39  ;;  %270 = vmatpush1.bf16.msra.mxu1 %v261_v39 }
  0x28   :  { %208 = vrot.lane.b32.xlu1 %v29_v37, %s310_s14  ;;  %206 = vrot.lane.b32.xlu0 %v28_v38, %s310_s14 }
  0x2c   :  { %212 = vrot.lane.b32.xlu1 %v31_v40, %s310_s14  ;;  %210 = vrot.lane.b32.xlu0 %v30_v41, %s310_s14 }
  0x96   :  { %v59_v44 = vpop.permute.xlu1 %58  ;;  %v56_v45 = vpop.permute.xlu0 %55 }
  0x97   :  { %vm67_vm9 = vcmp.eq.s32.totalorder %v53_v43, %v59_v44  ;;  %vm66_vm10 = vcmp.eq.s32.totalorder %v53_v43, %v56_v45 }
  0x98   :  { %v239_v46 = vsel %vm66_vm10, 1.0, %v308_v1  ;;  %v240_v47 = vsel %vm67_vm9, 1.0, %v308_v1 }
  0x99   :  { %243 = vmatmul.mubr.msk.f32.vlgmr.msra.gmra.mrb[0].mxu0 %vm94_vm8, %v239_v46 }
  0x9a   :  { %v65_v48 = vpop.permute.xlu1 %64  ;;  %v62_v49 = vpop.permute.xlu0 %61  ;;  %177 = vmatprep.mubr.f32.mxu0 %v308_v1 }
  0x9b   :  { %vm68_vm11 = vcmp.eq.s32.totalorder %v53_v43, %v62_v49  ;;  %vm69_vm12 = vcmp.eq.s32.totalorder %v53_v43, %v65_v48 }
  0x9c   :  { %v241_v50 = vsel %vm68_vm11, 1.0, %v308_v1  ;;  %v242_v51 = vsel %vm69_vm12, 1.0, %v308_v1 }
  0x9d   :  { %244 = vmatmul.mubr.msk.f32.gmra.mrb[2].mxu0 %vm94_vm8, %v240_v47  ;;  %245 = vmatmul.mubr.msk.f32.vlgmr.msra.gmra.mrb[0].mxu1 %vm94_vm8, %v241_v50 }
  0x9e   :  { %189 = vmatprep.mubr.f32.mxu1 %v308_v1  ;;  %v199_v52 = vpop.permute.xlu0 %198  ;;  %v201_v53 = vpop.permute.xlu1 %200 }
  0xa1   :  { %246 = vmatmul.mubr.msk.f32.gmra.mrb[2].mxu1 %vm94_vm8, %v242_v51 }
  0xa2   :  { %v203_v54 = vpop.permute.xlu0 %202  ;;  %v205_v55 = vpop.permute.xlu1 %204 }
  0xa6   :  { %v207_v57 = vpop.permute.xlu0 %206  ;;  %v209_v59 = vpop.permute.xlu1 %208 }
  0xa7   :  { %v214_v63 = vsel %vm379_vm13, %v199_v52, %v207_v57  ;;  %v215_v8 = vsel %vm379_vm13, %v201_v53, %v209_v59 }
  0xaa   :  { %v211_v0 = vpop.permute.xlu0 %210  ;;  %v213_v11 = vpop.permute.xlu1 %212 }
  0xab   :  { %v216_v10 = vsel %vm379_vm13, %v203_v54, %v211_v0  ;;  %v217_v19 = vsel %vm379_vm13, %v205_v55, %v213_v11 }
 0x16c   :  { %v173_v60 = vpop.f32.mrb[0].mxu0 }
 0x16d   :  { %v218_v61 = vmul.f32 %v173_v60, %v28_v38  ;;  %v175_v62 = vpop.f32.mrb[1].mxu0 }
 0x16e   :  { %v222_v1 = vmul.f32 %v214_v63, %v175_v62 }
 0x170   :  { %v226_v2 = vadd.f32 %v222_v1, %v218_v61  ;;  %v179_v3 = vpop.f32.mrb[2].mxu0  ;;  %v185_v4 = vpop.f32.mrb[0].mxu1 }
 0x171   :  { %v219_v5 = vmul.f32 %v179_v3, %v29_v37  ;;  %v220_v6 = vmul.f32 %v185_v4, %v30_v41  ;;  %v181_v7 = vpop.f32.mrb[3].mxu0  ;;  %v187_v9 = vpop.f32.mrb[1].mxu1 }
 0x172   :  { %230 = vst [vmem:[%s406_s3] sm:$0xff] %v226_v2  ;;  %v223_v12 = vmul.f32 %v215_v8, %v181_v7  ;;  %v224_v13 = vmul.f32 %v216_v10, %v187_v9 }
 0x174   :  { %v227_v14 = vadd.f32 %v223_v12, %v219_v5  ;;  %v228_v15 = vadd.f32 %v224_v13, %v220_v6  ;;  %v191_v16 = vpop.f32.mrb[2].mxu1 }
 0x175   :  { %v221_v17 = vmul.f32 %v191_v16, %v31_v40  ;;  %v193_v18 = vpop.f32.mrb[3].mxu1 }
 0x176   :  { %231 = vst [vmem:[%s406_s3 + $0x8] sm:$0xff] %v227_v14  ;;  %232 = vst [vmem:[%s406_s3 + $0x10] sm:$0xff] %v228_v15  ;;  %v225_v20 = vmul.f32 %v217_v19, %v193_v18 }
 0x178   :  { %v229_v21 = vadd.f32 %v225_v20, %v221_v17 }
 0x17a   :  { %233 = vst [vmem:[%s406_s3 + $0x18] sm:$0xff] %v229_v21 }
 0x17b   :  { %238 = vsyncpa [#allocation3], 1 }

</bundles_post_ra>
